<compile_context>
chip_gen: v5e
topology: v5e:2x2
jax: 0.10.0
libtpu: 0.0.40
codegen_flags: <defaults>
</compile_context>

<pallas_src>
import jax
import jax.numpy as jnp
import numpy as np
from jax.experimental import pallas as pl
from jax.experimental.pallas import tpu as pltpu


def top_head_kernel(x_ref, w1_ref, b1_ref, w2_ref, b2_ref, o_ref):
    # x_ref:  (C_in, tl)   one batch element, tl positions (lane axis)
    # w1_ref: (H, C_in)    conv1 weight (PyTorch layout, kernel dim squeezed)
    # b1_ref: (H, 1)
    # w2_ref: (C_out, H)   conv2 weight
    # b2_ref: (C_out, 1)
    # o_ref:  (C_out, tl)
    h = jnp.maximum(x_ref[...], 0.0)                                    # relu(x)
    h = jnp.dot(w1_ref[...], h, preferred_element_type=jnp.float32)     # conv1 (1x1)
    h = jnp.maximum(h + b1_ref[...], 0.0)                               # + bias, relu
    out = jnp.dot(w2_ref[...], h, preferred_element_type=jnp.float32)   # conv2 (1x1)
    o_ref[...] = (out + b2_ref[...]).astype(o_ref.dtype)


def _round_up(x, m):
    return ((x + m - 1) // m) * m


def _choose_lane_tile(L, C_in, C_out, *, vmem_budget_bytes=8 * 1024 * 1024,
                      hard_cap=8192):
    """Pick the lane-tile width tl (multiple of 128).

    Budget covers the double-buffered x and out tiles (f32).  Prefer one tile
    covering the whole (padded) length; otherwise pick the multiple of 128 in
    [max_tl/2, max_tl] that minimizes total padding (largest on ties)."""
    per_col_bytes = (C_in + C_out) * 4 * 2          # x + out, double-buffered
    max_tl = max(128, min(hard_cap, (vmem_budget_bytes // per_col_bytes) // 128 * 128))

    Lr = _round_up(L, 128)
    if Lr <= max_tl:
        return Lr                                   # single tile, zero waste

    best_tl, best_pad = max_tl, _round_up(L, max_tl) - L
    lo = max(128, (max_tl // 2) // 128 * 128)
    for cand in range(max_tl, lo - 1, -128):
        pad = _round_up(L, cand) - L
        if pad < best_pad:
            best_tl, best_pad = cand, pad
            if pad == 0:
                break
    return best_tl


def top_head_forward(x_ncl, w1, b1, w2, b2):
    """x_ncl: (N, C_in, L). w1: (H, C_in), b1: (H,), w2: (C_out, H), b2: (C_out,).
    Returns logits of shape (N, C_out, L) -- same semantics as Top_head.forward."""
    N, C_in, L = x_ncl.shape
    H = w1.shape[0]
    C_out = w2.shape[0]

    tl = _choose_lane_tile(L, C_in, C_out)
    L_pad = _round_up(L, tl)
    x_in = x_ncl if L_pad == L else jnp.pad(
        x_ncl, ((0, 0), (0, 0), (0, L_pad - L)))

    b1_r = b1.reshape(H, 1)
    b2_r = b2.reshape(C_out, 1)

    grid = (N, L_pad // tl)

    flops_per_step = 2 * tl * (C_in * H + H * C_out)
    bytes_per_step = 4 * tl * (C_in + C_out)
    cost = pl.CostEstimate(
        flops=flops_per_step * grid[0] * grid[1],
        transcendentals=0,
        bytes_accessed=bytes_per_step * grid[0] * grid[1]
        + 4 * (H * C_in + H + C_out * H + C_out),
    )

    out = pl.pallas_call(
        top_head_kernel,
        out_shape=jax.ShapeDtypeStruct((N, C_out, L_pad), x_ncl.dtype),
        grid_spec=pltpu.PrefetchScalarGridSpec(
            num_scalar_prefetch=0,
            grid=grid,
            in_specs=[
                # x: one batch element (squeezed), tl-wide position tile.
                pl.BlockSpec((None, C_in, tl), lambda n, l: (n, 0, l)),
                # Weights / biases: constant index_map -> resident in VMEM.
                pl.BlockSpec((H, C_in), lambda n, l: (0, 0)),
                pl.BlockSpec((H, 1), lambda n, l: (0, 0)),
                pl.BlockSpec((C_out, H), lambda n, l: (0, 0)),
                pl.BlockSpec((C_out, 1), lambda n, l: (0, 0)),
            ],
            out_specs=pl.BlockSpec((None, C_out, tl), lambda n, l: (n, 0, l)),
        ),
        compiler_params=pltpu.CompilerParams(
            dimension_semantics=("parallel", "parallel")),
        cost_estimate=cost,
    )(x_in, w1, b1_r, w2, b2_r)

    if L_pad != L:
        out = out[:, :, :L]
    return out


def _reference(x, w1, b1, w2, b2):
    h = jnp.maximum(x, 0.0)
    h = jnp.einsum("hc,ncl->nhl", w1, h) + b1[None, :, None]
    h = jnp.maximum(h, 0.0)
    return jnp.einsum("oh,nhl->nol", w2, h) + b2[None, :, None]


def kaiming_uniform(key, shape, fan_in):
    # nn.init.kaiming_uniform_(w, nonlinearity='relu'): gain = sqrt(2),
    # bound = gain * sqrt(3 / fan_in)
    bound = np.sqrt(2.0) * np.sqrt(3.0 / fan_in)
    return jax.random.uniform(key, shape, jnp.float32, -bound, bound)


def conv_bias_init(key, shape, fan_in):
    # PyTorch Conv1d default bias init: uniform(-1/sqrt(fan_in), 1/sqrt(fan_in))
    bound = 1.0 / np.sqrt(fan_in)
    return jax.random.uniform(key, shape, jnp.float32, -bound, bound)


if __name__ == "__main__":
    key = jax.random.PRNGKey(0)

    # --- Case 1: small shapes consistent with the module (N, C_in, L). ---
    N, C_in, L = 2, 16, 16
    hidden = 32
    C_out = 8

    kx, kw1, kb1, kw2, kb2, key = jax.random.split(key, 6)
    x = jax.random.normal(kx, (N, C_in, L), jnp.float32)
    # Conv1d(C_in, hidden, 1) weight has shape (hidden, C_in, 1); kernel dim squeezed.
    w1 = kaiming_uniform(kw1, (hidden, C_in), fan_in=C_in)       # (H, C_in)
    b1 = conv_bias_init(kb1, (hidden,), fan_in=C_in)
    w2 = kaiming_uniform(kw2, (C_out, hidden), fan_in=hidden)    # (C_out, H)
    b2 = conv_bias_init(kb2, (C_out,), fan_in=hidden)

    logits = jax.block_until_ready(top_head_forward(x, w1, b1, w2, b2))
    ref = _reference(x, w1, b1, w2, b2)
    np.testing.assert_allclose(np.asarray(logits), np.asarray(ref),
                               rtol=1e-5, atol=1e-5)
    assert logits.shape == (N, C_out, L)

    # --- Case 2: non-multiple-of-128 length exercises the pad + slice path. ---
    N2, C_in2, L2, H2, C_out2 = 2, 64, 300, 256, 21
    kx, kw1, kb1, kw2, kb2, key = jax.random.split(key, 6)
    x2 = jax.random.normal(kx, (N2, C_in2, L2), jnp.float32)
    w1b = kaiming_uniform(kw1, (H2, C_in2), fan_in=C_in2)
    b1b = conv_bias_init(kb1, (H2,), fan_in=C_in2)
    w2b = kaiming_uniform(kw2, (C_out2, H2), fan_in=H2)
    b2b = conv_bias_init(kb2, (C_out2,), fan_in=H2)

    logits2 = jax.block_until_ready(top_head_forward(x2, w1b, b1b, w2b, b2b))
    ref2 = _reference(x2, w1b, b1b, w2b, b2b)
    np.testing.assert_allclose(np.asarray(logits2), np.asarray(ref2),
                               rtol=1e-5, atol=1e-5)
    assert logits2.shape == (N2, C_out2, L2)

    print("KERNEL_OK")
</pallas_src>

<mosaic_0001>
module attributes {stable_mosaic.version = 11 : i64} {
  func.func @top_head_kernel(%arg0: i32, %arg1: i32, %arg2: memref<1x16x128xf32, #tpu.memory_space<vmem>>, %arg3: memref<32x16xf32, #tpu.memory_space<vmem>>, %arg4: memref<32x1xf32, #tpu.memory_space<vmem>>, %arg5: memref<8x32xf32, #tpu.memory_space<vmem>>, %arg6: memref<8x1xf32, #tpu.memory_space<vmem>>, %arg7: memref<1x8x128xf32, #tpu.memory_space<vmem>>) attributes {dimension_semantics = [#tpu.dimension_semantics<parallel>, #tpu.dimension_semantics<parallel>], iteration_bounds = array<i64: 2, 1>, scalar_prefetch = 0 : i64, scratch_operands = 0 : i64, tpu.core_type = #tpu.core_type<tc>, window_params = [{transform_indices = @transform_0, window_bounds = array<i64: 1, 16, 128>}, {pipeline_mode = #tpu.pipeline_mode<synchronous>, transform_indices = @transform_1, window_bounds = array<i64: 32, 16>}, {pipeline_mode = #tpu.pipeline_mode<synchronous>, transform_indices = @transform_2, window_bounds = array<i64: 32, 1>}, {pipeline_mode = #tpu.pipeline_mode<synchronous>, transform_indices = @transform_3, window_bounds = array<i64: 8, 32>}, {pipeline_mode = #tpu.pipeline_mode<synchronous>, transform_indices = @transform_4, window_bounds = array<i64: 8, 1>}, {transform_indices = @transform_5, window_bounds = array<i64: 1, 8, 128>}]} {
    %c0 = arith.constant 0 : index
    %c0_0 = arith.constant 0 : index
    %c0_1 = arith.constant 0 : index
    %0 = vector.load %arg2[%c0, %c0_0, %c0_1] : memref<1x16x128xf32, #tpu.memory_space<vmem>>, vector<1x16x128xf32>
    %1 = vector.shape_cast %0 : vector<1x16x128xf32> to vector<16x128xf32>
    %cst = arith.constant 0.000000e+00 : f32
    %2 = vector.broadcast %cst : f32 to vector<16x128xf32>
    %3 = arith.maximumf %1, %2 : vector<16x128xf32>
    %c0_2 = arith.constant 0 : index
    %c0_3 = arith.constant 0 : index
    %4 = vector.load %arg3[%c0_2, %c0_3] : memref<32x16xf32, #tpu.memory_space<vmem>>, vector<32x16xf32>
    %cst_4 = arith.constant dense<0.000000e+00> : vector<32x128xf32>
    %5 = tpu.matmul %4, %3, %cst_4 {dimension_numbers = #tpu.dot_dimension_numbers<[1], [0], [0], [1], [0, 0, 1, 1], [], []>} : vector<32x16xf32>, vector<16x128xf32>, vector<32x128xf32> -> vector<32x128xf32>
    %c0_5 = arith.constant 0 : index
    %c0_6 = arith.constant 0 : index
    %6 = vector.load %arg4[%c0_5, %c0_6] : memref<32x1xf32, #tpu.memory_space<vmem>>, vector<32x1xf32>
    %7 = vector.broadcast %6 : vector<32x1xf32> to vector<32x128xf32>
    %8 = arith.addf %5, %7 : vector<32x128xf32>
    %cst_7 = arith.constant 0.000000e+00 : f32
    %9 = vector.broadcast %cst_7 : f32 to vector<32x128xf32>
    %10 = arith.maximumf %8, %9 : vector<32x128xf32>
    %c0_8 = arith.constant 0 : index
    %c0_9 = arith.constant 0 : index
    %11 = vector.load %arg5[%c0_8, %c0_9] : memref<8x32xf32, #tpu.memory_space<vmem>>, vector<8x32xf32>
    %cst_10 = arith.constant dense<0.000000e+00> : vector<8x128xf32>
    %12 = tpu.matmul %11, %10, %cst_10 {dimension_numbers = #tpu.dot_dimension_numbers<[1], [0], [0], [1], [0, 0, 1, 1], [], []>} : vector<8x32xf32>, vector<32x128xf32>, vector<8x128xf32> -> vector<8x128xf32>
    %c0_11 = arith.constant 0 : index
    %c0_12 = arith.constant 0 : index
    %13 = vector.load %arg6[%c0_11, %c0_12] : memref<8x1xf32, #tpu.memory_space<vmem>>, vector<8x1xf32>
    %14 = vector.broadcast %13 : vector<8x1xf32> to vector<8x128xf32>
    %15 = arith.addf %12, %14 : vector<8x128xf32>
    %c0_13 = arith.constant 0 : index
    %c0_14 = arith.constant 0 : index
    %c0_15 = arith.constant 0 : index
    %16 = vector.load %arg7[%c0_13, %c0_14, %c0_15] : memref<1x8x128xf32, #tpu.memory_space<vmem>>, vector<1x8x128xf32>
    %17 = vector.shape_cast %16 : vector<1x8x128xf32> to vector<8x128xf32>
    %18 = vector.shape_cast %15 : vector<8x128xf32> to vector<1x8x128xf32>
    tpu.vector_store %arg7[%c0_13, %c0_14, %c0_15], %18 {strides = array<i32>} : memref<1x8x128xf32, #tpu.memory_space<vmem>>, vector<1x8x128xf32>,
    return
  }
  func.func @transform_0(%arg0: i32, %arg1: i32) -> (i32, i32, i32) {
    %c0_i32 = arith.constant 0 : i32
    %c0_i32_0 = arith.constant 0 : i32
    return %arg0, %c0_i32, %arg1 : i32, i32, i32
  }
  func.func @transform_1(%arg0: i32, %arg1: i32) -> (i32, i32) {
    %c0_i32 = arith.constant 0 : i32
    %c0_i32_0 = arith.constant 0 : i32
    %c0_i32_1 = arith.constant 0 : i32
    return %c0_i32, %c0_i32_0 : i32, i32
  }
  func.func @transform_2(%arg0: i32, %arg1: i32) -> (i32, i32) {
    %c0_i32 = arith.constant 0 : i32
    %c0_i32_0 = arith.constant 0 : i32
    %c0_i32_1 = arith.constant 0 : i32
    return %c0_i32, %c0_i32_0 : i32, i32
  }
  func.func @transform_3(%arg0: i32, %arg1: i32) -> (i32, i32) {
    %c0_i32 = arith.constant 0 : i32
    %c0_i32_0 = arith.constant 0 : i32
    %c0_i32_1 = arith.constant 0 : i32
    return %c0_i32, %c0_i32_0 : i32, i32
  }
  func.func @transform_4(%arg0: i32, %arg1: i32) -> (i32, i32) {
    %c0_i32 = arith.constant 0 : i32
    %c0_i32_0 = arith.constant 0 : i32
    %c0_i32_1 = arith.constant 0 : i32
    return %c0_i32, %c0_i32_0 : i32, i32
  }
  func.func @transform_5(%arg0: i32, %arg1: i32) -> (i32, i32, i32) {
    %c0_i32 = arith.constant 0 : i32
    %c0_i32_0 = arith.constant 0 : i32
    return %arg0, %c0_i32, %arg1 : i32, i32, i32
  }
}

</mosaic_0001>

<bundles_post_ra>
// kernel: tpu_custom_call.1
= control target key start
LH: loop header
LB: loop body
LE: loop exit
PB: predicated region body
PF: predicated region fallthrough
CT: control target
= control target key end

     0   :  { %10 = vsyncpa [#allocation3], 0  ;;  %s768_s0 = inlined_call_operand.vmem [shape: f32[2,16,128], index: 0, kind: input, shape index: {}]   ;;  %s769_s1 = inlined_call_operand.vmem [shape: f32[32,16], index: 1, kind: input, shape index: {}]   ;;  %s770_s2 = inlined_call_operand.vmem [shape: f32[32,1], index: 2, kind: input, shape index: {}]   ;;  %s771_s3 = inlined_call_operand.vmem [shape: f32[8,32], index: 3, kind: input, shape index: {}]   ;;  %s772_s4 = inlined_call_operand.vmem [shape: f32[8,1], index: 4, kind: input, shape index: {}]   ;;  %s773_s5 = inlined_call_operand.hbm [shape: f32[2,8,128], index: 5, kind: output, shape index: {}]  }
   0x1   :  { %12 = vsyncpa [#allocation3 + $0x1], 0  ;;  %s641_s18 = smov 0   ;;  %s643_s19 = smov 0  }
   0x2   :  { %s645_s20 = smov 0   ;;  %s647_s21 = smov 0  }
   0x3   :  { %s649_s22 = smov 0   ;;  %s651_s23 = smov 0  }
   0x4 LB: > { %s449_s24 = sadd.s32 4294967295, %s608_s23   ;;  %s450_s25 = sadd.s32 4294967294, %s608_s23   ;;  %s608_s23 = sphi %s651_s23, %s18_s23   ;;  %s604_s22 = sphi %s649_s22, %s780_s22   ;;  %s600_s21 = sphi %s647_s21, %s779_s21   ;;  %s596_s20 = sphi %s645_s20, %s778_s20   ;;  %s592_s19 = sphi %s643_s19, %s777_s19   ;;  %s588_s18 = sphi %s641_s18, %s776_s18  }
   0x5   : > { %s30_s26 = sadd.s32 1, %s604_s22  ;;  %s151_s27 = sadd.s32 1, %s596_s20 }
   0x6   : > { %p32_p0 = scmp.ge.s32.totalorder %s30_s26, 2  ;;  %p161_p1 = scmp.ne.s32.totalorder %s596_s20, %s592_s19 }
   0x7   : > { %p162_p2 = scmp.eq.s32.totalorder %s449_s24, 1  ;;  %p167_p3 = scmp.ne.s32.totalorder %s592_s19, %s588_s18 }
   0x8   : > { %s782_s26 = smov (%p32_p0, %s30_s26), 0  ;;  %p168_p5 = scmp.eq.s32.totalorder %s450_s25, 1 }
   0x9   : > { %p681_p4 = por %p162_p2, %p161_p1  ;;  %s146_s29 = ssub.s32 %s604_s22, %s782_s26 }
   0xa   : > { %p453_p6 = scmp.ge.s32.totalorder %s608_s23, 1  ;;  %p149_p7 = scmp.eq.s32.totalorder %s146_s29, 0 }
   0xb   : > { %p688_p8 = por %p168_p5, %p167_p3  ;;  %p209_p9 = scmp.lt.s32.totalorder %s608_s23, 3 }
   0xc   : > { %s694_s6 = scalar_select %p149_p7, %s596_s20, %s151_s27  }
   0xd   : > { %p210_p10 = pnand %p453_p6, %p209_p9 }
   0xe   : > { %p240_p11 = scmp.lt.s32.totalorder (!%p210_p10), %s600_s21, 1  ;;  %s237_s17 = sand.u32 (!%p210_p10), 1, %s592_s19  }
   0xf   : > { %213 = sbr.rel (%p210_p10) target bundleno = 310 (0x136), region = 40  ;;  %s454_s24 = sshll.u32 (!%p210_p10), %s237_s17, 3 }
  0x10   : > { %s463_s25 = sshll.u32 (!%p210_p10), %s600_s21, 3  ;;  %s239_s8 = scalar_lea.vmem (!%p210_p10), [#allocation2], %s454_s24 }
  0x11   : > { %s370_s7 = scalar_lea.hbm (!%p210_p10), %s773_s5, %s463_s25  ;;  %s372_s9 = sshll.u32 (!%p210_p10), %s239_s8, 4  ;;  %s373_s9 = int_to_ptr.vmem [resolvable:$true] %s372_s9 }
  0x12   : > { %s374_s10 = sshll.u32 (!%p210_p10), %s370_s7, 4  ;;  %s375_s10 = int_to_ptr.hbm [resolvable:$true] %s374_s10 }
  0x14   : > { %v610_v0 = vmov 0   ;;  %v259_v1 = vld [vmem:[%s770_s2 + $0x18] sm:$0xff]  ;;  %v257_v2 = vld [vmem:[%s770_s2 + $0x8] sm:$0xff]  ;;  %s241_s11 = scalar_select %p240_p11, %s600_s21, 1  ;;  %v258_v7 = vld [vmem:[%s770_s2 + $0x10] sm:$0xff]  ;;  %vm280_vm0 = vcmask 130048  }
  0x15   : > { %527 = vset.pattern.permute.xlu0 %v610_v0  ;;  %528 = vset.pattern.permute.xlu1 %v610_v0  ;;  %v253_v8 = vld [vmem:[%s769_s1 + $0x8] sm:$0xff]  ;;  %v255_v9 = vld [vmem:[%s769_s1 + $0x18] sm:$0xff]  ;;  %v256_v10 = vld [vmem:[%s770_s2] sm:$0xff]  ;;  %vm333_vm1 = vcmask 261120  }
  0x16   : > { %277 = vperm.xlu0 %527, %v259_v1   ;;  %267 = vperm.xlu1 %528, %v257_v2   ;;  %s466_s12 = sshll.u32 %s241_s11, 4  ;;  %v252_v11 = vld [vmem:[%s769_s1] sm:$0xff]  ;;  %v254_v12 = vld [vmem:[%s769_s1 + $0x10] sm:$0xff]  ;;  %s359_s11 = scalar_lea.sflag [#allocation3], %s237_s17 }
  0x17   : > { %529 = vset.pattern.permute.xlu2 %v610_v0  ;;  %s247_s15 = scalar_lea.vmem %s768_s0, %s466_s12  ;;  %v327_v13 = vld [vmem:[%s772_s4] sm:$0xff]  ;;  %s544_s12 = sshra.s32 %s375_s10, 4  ;;  %s545_s12 = int_to_ptr.hbm [resolvable:$true] %s544_s12 }
  0x18   : > { %v249_v3 = vld [vmem:[%s247_s15 + $0x8] sm:$0xff]  ;;  %v248_v4 = vld [vmem:[%s247_s15] sm:$0xff]  ;;  %330 = vperm.xlu2 %529, %v327_v13   ;;  %s546_s13 = scalar_lea.hbm %s545_s12, 8  ;;  %s550_s15 = scalar_lea.hbm %s773_s5, 16 }
  0x19   : > { %v251_v5 = vmax.f32 %v249_v3, 0.0  ;;  %v250_v6 = vmax.f32 %v248_v4, 0.0  ;;  %v326_v30 = vld [vmem:[%s771_s3] sm:$0xff]  ;;  %p547_p12 = scmp.ne.s32.totalorder %s545_s12, %s546_s13  ;;  %p551_p1 = scmp.lt.s32.totalorder %s545_s12, %s773_s5 }
  0x1a   : > { %p552_p2 = scmp.lt.s32.totalorder %s550_s15, %s546_s13 }
  0x1b   : > { %467 = vmatpush.msra.mxu2 %v251_v5  ;;  %468 = vmatpush.msra.mxu3 %v251_v5  ;;  %p548_p13 = pnand %p547_p12, %p681_p4 }
  0x1c   : > { %307 = vmatpush.msra.mxu0 %v251_v5  ;;  %p553_p3 = por %p552_p2, %p551_p1 }
  0x1d   : > { %469 = vmatpush.msra.mxu2 %v250_v6  ;;  %470 = vmatpush.msra.mxu3 %v250_v6  ;;  %p549_p0 = pneg %p548_p13 }
  0x1e   : > { %272 = vperm.xlu0 %527, %v258_v7   ;;  %458 = vmatmul.msk.f32.vlgmr.msra.gmra.mxu2 %vm280_vm0, %v253_v8 }
  0x1f   : > { %460 = vmatmul.msk.f32.vlgmr.msra.gmra.mxu3 %vm280_vm0, %v255_v9  ;;  %308 = vmatpush.msra.mxu0 %v250_v6  ;;  %p554_p5 = pnand %p553_p3, %p549_p0 }
  0x20   : > { %262 = vperm.xlu1 %528, %v256_v10   ;;  %457 = vmatmul.msk.f32.vlgmr.msra.gmra.mxu0 %vm280_vm0, %v252_v11 }
  0x26   : > { %459 = vmatmul.msk.f32.gmra.mxu2 %vm280_vm0, %v254_v12 }
  0x72   : > { %v331_v31 = vpop.permute.xlu2 %330 }
  0x88   : > { %v278_v14 = vpop.permute.xlu0 %277  ;;  %v268_v15 = vpop.permute.xlu1 %267 }
  0x90   : > { %v273_v20 = vpop.permute.xlu0 %272 }
  0x92   : > { %v263_v21 = vpop.permute.xlu1 %262 }
  0x9d   : > { %v310_v22 = vpop.f32.mrf.mxu0 }
  0x9e   : > { %v311_v26 = vadd.f32 %v310_v22, %v263_v21 }
  0xa0   : > { %v322_v29 = vmax.f32 %v311_v26, 0.0 }
  0xa1   : > { %v313_v16 = vpop.f32.mrf.mxu2 }
  0xa2   : > { %v319_v17 = vpop.f32.mrf.mxu3  ;;  %v314_v24 = vadd.f32 %v313_v16, %v268_v15 }
  0xa3   : > { %v320_v18 = vadd.f32 %v319_v17, %v278_v14 }
  0xa4   : > { %v323_v28 = vmax.f32 %v314_v24, 0.0 }
  0xa5   : > { %v325_v19 = vmax.f32 %v320_v18, 0.0 }
  0xa7   : > { %349 = vmatpush.msra.mxu1 %v325_v19 }
  0xa9   : > { %v316_v23 = vpop.f32.mrf.mxu2 }
  0xaa   : > { %v317_v25 = vadd.f32 %v316_v23, %v273_v20 }
  0xac   : > { %v324_v27 = vmax.f32 %v317_v25, 0.0 }
  0xae   : > { %350 = vmatpush.msra.mxu1 %v324_v27 }
  0xb0   : > { %351 = vmatpush.msra.mxu1 %v323_v28 }
  0xb2   : > { %352 = vmatpush.msra.mxu1 %v322_v29 }
  0xb3   : > { %461 = vmatmul.msk.f32.vlgmr.msra.gmra.mxu1 %vm333_vm1, %v326_v30 }
 0x130   : > { %v354_v32 = vpop.f32.mrf.mxu1 }
 0x131   : > { %v355_v33 = vadd.f32 %v354_v32, %v331_v31 }
 0x133   : > { %357 = vst [vmem:[%s239_s8] sm:$0xff] %v355_v33 }
 0x134   : > { %557 = shalt.err (!%p554_p5)
}
 0x135   : > { %471 = dma.vmem_to_hbm [thread:$0]  (%p681_p4), %s373_s9, 128, %s375_s10, %s359_s11  }
 0x136 PF: > { %p477_p6 = scmp.ge.s32.totalorder %s608_s23, 2  ;;  %s386_s17 = sand.u32 1, %s588_s18  }
 0x137   : > { %s387_s25 = scalar_lea.sflag [#allocation3], %s386_s17 }
 0x138   : > { %p474_p7 = pnand %p477_p6, %p688_p8 }
 0x13a   : > { %p475_p9 = pneg %p474_p7 }
 0x13c   : > { %583 = dma.done.wait (%p475_p9), %s387_s25, 128  }
 0x13d   : > { %585 = vsyncadd (%p475_p9), %s387_s25, 4294967168  ;;  %s18_s23 = sadd.s32 1, %s608_s23   ;;  %s776_s18 = smov %s592_s19 }
 0x13e   : > { %p15_p10 = scmp.ge.s32.totalorder %s18_s23, 4   ;;  %s777_s19 = smov %s596_s20 }
 0x13f   : > { %s778_s20 = smov %s694_s6  ;;  %s779_s21 = smov %s604_s22 }
 0x140   : > { %s780_s22 = smov %s782_s26  ;;  %17 = sbr.rel (!%p15_p10) target bundleno = 4 (0x4), region = 75 }
 0x145   :  { %393 = vsyncpa [#allocation3], 1 }
 0x146   :  { %395 = vsyncpa [#allocation3 + $0x1], 1 }

</bundles_post_ra>
